<compile_context>
chip_gen: v5e
topology: v5e:2x2
jax: 0.10.0
libtpu: 0.0.40
codegen_flags: <defaults>
</compile_context>

<pallas_src>
import functools

import jax
import jax.numpy as jnp
from jax.experimental import pallas as pl
from jax.experimental.pallas import tpu as pltpu


# Trapezoid parameters from the module: a=0.0, b=0.3, c=0.7, d=1.0.
# Since a == 0 and (b - a) == (d - c) == 0.3, the membership
#   max(min((y - a)/(b - a), (d - y)/(d - c)), 0)
# folds to max(min(y, 1 - y) * (1/0.3), 0)   (~1 ulp vs. the two divides).
_INV_SLOPE = 1.0 / 0.3

_LANE = 128                       # lane-tile granularity for the M axis
_VMEM_STREAM_BUDGET = 6 << 20     # per-tile streaming bytes (x2 when double-buffered)
_TM_TARGET_BYTES = 4 << 20        # aim for a few MiB of patches per grid step
_VMEM_LIMIT_BYTES = 32 << 20      # explicit scoped-VMEM limit (<= v7x 64 MiB physical)


# ---------------- Pallas kernel ----------------

def _fuzzy_conv_kernel(w_ref, b_ref, p_ref, o_ref):
    # w_ref: (OC, K)   weight matrix (grid-resident)
    # b_ref: (OC, 1)   bias column (broadcasts over the lane/M dim)
    # p_ref: (K, TM)   im2col patches tile: K on sublanes, M on lanes
    # o_ref: (OC, TM)  lane-dense output tile
    acc = jnp.dot(w_ref[...], p_ref[...], preferred_element_type=jnp.float32)
    acc = acc + b_ref[...]
    y = jnp.maximum(jnp.minimum(acc, 1.0 - acc) * _INV_SLOPE, 0.0)
    o_ref[...] = y.astype(o_ref.dtype)


# ---------------- wrapper helpers ----------------

def _round_up(v, m):
    return ((v + m - 1) // m) * m


def _cdiv(a, b):
    return (a + b - 1) // b


def _im2col_km(x, kh, kw, stride, padding):
    """x: (N, C, H, W) -> patches (C*KH*KW, N*OH*OW), written in ONE pass.

    K ordering is (c, kh, kw) to match PyTorch weight.reshape(OC, C*KH*KW);
    M ordering is (n, oh, ow) so the kernel output reshapes directly to
    (OC, N, OH, OW).  Only the input-sized x is transposed/padded; the
    KH*KW-expanded array is produced directly in its final layout (the final
    reshape is contiguous, so no extra K*M-sized copy)."""
    n, cin, h, w = x.shape
    oh = (h + 2 * padding - kh) // stride + 1
    ow = (w + 2 * padding - kw) // stride + 1
    xc = jnp.pad(x.transpose(1, 0, 2, 3),                 # (C, N, Hp, Wp)
                 ((0, 0), (0, 0), (padding, padding), (padding, padding)))
    cols = []
    for i in range(kh):
        for j in range(kw):
            cols.append(
                xc[:, :, i : i + stride * oh : stride, j : j + stride * ow : stride]
            )                                              # (C, N, OH, OW)
    pat = jnp.stack(cols, axis=1)                          # (C, KH*KW, N, OH, OW)
    return pat.reshape(cin * kh * kw, n * oh * ow), oh, ow


def _choose_tm(m, k, oc):
    """Lane-tile size for the M (output-pixel) axis, VMEM-budget driven."""
    if m <= _LANE:
        return m                                   # single full-extent block
    col_bytes = 4 * (k + oc)                       # streamed f32 bytes per output column
    tm_cap = max(_LANE, (_VMEM_STREAM_BUDGET // col_bytes) // _LANE * _LANE)
    tm_target = max(_LANE,
                    min(tm_cap, _round_up(_cdiv(_TM_TARGET_BYTES, col_bytes), _LANE)))
    # >= 2 grid steps so dimension_semantics=("parallel",) shards across v7x's
    # two TensorCores; keep the step count even so both cores get equal work.
    blocks = max(2, _cdiv(m, tm_target))
    if blocks % 2:
        blocks += 1
    return min(tm_cap, _round_up(_cdiv(m, blocks), _LANE))


# ---------------- wrapper ----------------

@functools.partial(jax.jit, static_argnames=("stride", "padding", "dilation", "groups"))
def fuzzy_conv2d(x, weight, bias, *, stride=1, padding=0, dilation=1, groups=1):
    """x: (N, C, H, W) NCHW.  weight: (OC, C, KH, KW).  bias: (OC,).
    Returns (N, OC, OH, OW), matching PyTorch FuzzyConv2d.forward."""
    if dilation != 1 or groups != 1:
        raise NotImplementedError("fuzzy_conv2d: only dilation=1 and groups=1 are supported")
    n, cin, _, _ = x.shape
    oc, _, kh, kw = weight.shape

    patches, oh, ow = _im2col_km(x, kh, kw, stride, padding)   # (K, M)
    k, m = patches.shape

    w_mat = weight.reshape(oc, k)        # tiny; no OC/K padding needed (full-dim blocks)
    b_col = bias.reshape(oc, 1)

    tm = _choose_tm(m, k, oc)
    grid = (_cdiv(m, tm),)

    flops = 2 * oc * k * m
    bytes_accessed = 4 * (k * m + oc * k + oc + oc * m)

    out_t = pl.pallas_call(
        _fuzzy_conv_kernel,
        out_shape=jax.ShapeDtypeStruct((oc, m), x.dtype),
        grid_spec=pltpu.PrefetchScalarGridSpec(
            num_scalar_prefetch=0,
            grid=grid,
            in_specs=[
                pl.BlockSpec((oc, k), lambda i: (0, 0)),   # weight (resident)
                pl.BlockSpec((oc, 1), lambda i: (0, 0)),   # bias column
                pl.BlockSpec((k, tm), lambda i: (0, i)),   # patches tile (lane-dense M)
            ],
            out_specs=pl.BlockSpec((oc, tm), lambda i: (0, i)),
        ),
        compiler_params=pltpu.CompilerParams(
            dimension_semantics=("parallel",),
            vmem_limit_bytes=_VMEM_LIMIT_BYTES,
        ),
        cost_estimate=pl.CostEstimate(
            flops=flops, transcendentals=0, bytes_accessed=bytes_accessed),
    )(w_mat, b_col, patches)

    out = out_t.reshape(oc, n, oh, ow)   # (OC, N, OH, OW) -- M order was (n, oh, ow)
    return out.transpose(1, 0, 2, 3)     # leading-axis swap -> NCHW


# ---------------- reference (plain JAX) for sanity ----------------

def _reference(x, weight, bias, stride, padding):
    y = jax.lax.conv_general_dilated(
        x, weight, window_strides=(stride, stride),
        padding=[(padding, padding), (padding, padding)],
        dimension_numbers=("NCHW", "OIHW", "NCHW"),
    ) + bias.reshape(1, -1, 1, 1)
    # Original (unfused) fuzzy membership with a=0, b=0.3, c=0.7, d=1.0.
    return jnp.maximum(jnp.minimum((y - 0.0) / 0.3, (1.0 - y) / 0.3), 0.0)


def _run_case(key, n, cin, h, w, cout, ksz, stride, padding):
    k_x, k_w, k_b = jax.random.split(key, 3)
    x = jax.random.normal(k_x, (n, cin, h, w), dtype=jnp.float32)
    fan_in = cin * ksz * ksz
    bound = 1.0 / (fan_in ** 0.5)
    weight = jax.random.uniform(k_w, (cout, cin, ksz, ksz), jnp.float32, -bound, bound)
    bias = jax.random.uniform(k_b, (cout,), jnp.float32, -bound, bound)

    out = fuzzy_conv2d(x, weight, bias, stride=stride, padding=padding)
    out = jax.block_until_ready(out)

    ref = _reference(x, weight, bias, stride, padding)
    assert out.shape == ref.shape, (out.shape, ref.shape)
    assert jnp.allclose(out, ref, atol=1e-5, rtol=1e-5), "mismatch vs reference"


if __name__ == "__main__":
    key = jax.random.PRNGKey(0)
    k1, k2 = jax.random.split(key)

    # Module-consistent small shapes (NCHW): batch=2, in_ch=4, 16x16 spatial,
    # out_ch=8, kernel 3x3, stride 1, padding 1  -> M = 512, K = 36.
    _run_case(k1, n=2, cin=4, h=16, w=16, cout=8, ksz=3, stride=1, padding=1)

    # Awkward shapes (odd OC, tiny spatial, stride 2) to exercise the
    # unpadded full-dim block path and small-M single-block path.
    _run_case(k2, n=1, cin=3, h=7, w=7, cout=5, ksz=3, stride=2, padding=1)

    print("KERNEL_OK")
</pallas_src>

<mosaic_0001>
module attributes {stable_mosaic.version = 11 : i64} {
  func.func @_fuzzy_conv_kernel(%arg0: i32, %arg1: memref<8x36xf32, #tpu.memory_space<vmem>>, %arg2: memref<8x1xf32, #tpu.memory_space<vmem>>, %arg3: memref<36x256xf32, #tpu.memory_space<vmem>>, %arg4: memref<8x256xf32, #tpu.memory_space<vmem>>) attributes {dimension_semantics = [#tpu.dimension_semantics<parallel>], iteration_bounds = array<i64: 2>, scalar_prefetch = 0 : i64, scratch_operands = 0 : i64, tpu.core_type = #tpu.core_type<tc>, window_params = [{pipeline_mode = #tpu.pipeline_mode<synchronous>, transform_indices = @transform_0, window_bounds = array<i64: 8, 36>}, {pipeline_mode = #tpu.pipeline_mode<synchronous>, transform_indices = @transform_1, window_bounds = array<i64: 8, 1>}, {transform_indices = @transform_2, window_bounds = array<i64: 36, 256>}, {transform_indices = @transform_3, window_bounds = array<i64: 8, 256>}]} {
    %c0 = arith.constant 0 : index
    %c0_0 = arith.constant 0 : index
    %0 = vector.load %arg1[%c0, %c0_0] : memref<8x36xf32, #tpu.memory_space<vmem>>, vector<8x36xf32>
    %c0_1 = arith.constant 0 : index
    %c0_2 = arith.constant 0 : index
    %1 = vector.load %arg3[%c0_1, %c0_2] : memref<36x256xf32, #tpu.memory_space<vmem>>, vector<36x256xf32>
    %cst = arith.constant dense<0.000000e+00> : vector<8x256xf32>
    %2 = tpu.matmul %0, %1, %cst {dimension_numbers = #tpu.dot_dimension_numbers<[1], [0], [0], [1], [0, 0, 1, 1], [], []>} : vector<8x36xf32>, vector<36x256xf32>, vector<8x256xf32> -> vector<8x256xf32>
    %c0_3 = arith.constant 0 : index
    %c0_4 = arith.constant 0 : index
    %3 = vector.load %arg2[%c0_3, %c0_4] : memref<8x1xf32, #tpu.memory_space<vmem>>, vector<8x1xf32>
    %4 = vector.broadcast %3 : vector<8x1xf32> to vector<8x256xf32>
    %5 = arith.addf %2, %4 : vector<8x256xf32>
    %cst_5 = arith.constant 1.000000e+00 : f32
    %6 = vector.broadcast %cst_5 : f32 to vector<8x256xf32>
    %7 = arith.subf %6, %5 : vector<8x256xf32>
    %8 = arith.minimumf %5, %7 : vector<8x256xf32>
    %cst_6 = arith.constant 3.33333325 : f32
    %9 = vector.broadcast %cst_6 : f32 to vector<8x256xf32>
    %10 = arith.mulf %8, %9 : vector<8x256xf32>
    %cst_7 = arith.constant 0.000000e+00 : f32
    %11 = vector.broadcast %cst_7 : f32 to vector<8x256xf32>
    %12 = arith.maximumf %10, %11 : vector<8x256xf32>
    %c0_8 = arith.constant 0 : index
    %c0_9 = arith.constant 0 : index
    %13 = vector.load %arg4[%c0_8, %c0_9] : memref<8x256xf32, #tpu.memory_space<vmem>>, vector<8x256xf32>
    tpu.vector_store %arg4[%c0_8, %c0_9], %12 {strides = array<i32>} : memref<8x256xf32, #tpu.memory_space<vmem>>, vector<8x256xf32>,
    return
  }
  func.func @transform_0(%arg0: i32) -> (i32, i32) {
    %c0_i32 = arith.constant 0 : i32
    %c0_i32_0 = arith.constant 0 : i32
    %c0_i32_1 = arith.constant 0 : i32
    return %c0_i32, %c0_i32_0 : i32, i32
  }
  func.func @transform_1(%arg0: i32) -> (i32, i32) {
    %c0_i32 = arith.constant 0 : i32
    %c0_i32_0 = arith.constant 0 : i32
    %c0_i32_1 = arith.constant 0 : i32
    return %c0_i32, %c0_i32_0 : i32, i32
  }
  func.func @transform_2(%arg0: i32) -> (i32, i32) {
    %c0_i32 = arith.constant 0 : i32
    %c0_i32_0 = arith.constant 0 : i32
    return %c0_i32, %arg0 : i32, i32
  }
  func.func @transform_3(%arg0: i32) -> (i32, i32) {
    %c0_i32 = arith.constant 0 : i32
    %c0_i32_0 = arith.constant 0 : i32
    return %c0_i32, %arg0 : i32, i32
  }
}

</mosaic_0001>

<bundles_post_ra>
// kernel: fuzzy_conv2d.1
= control target key start
LH: loop header
LB: loop body
LE: loop exit
PB: predicated region body
PF: predicated region fallthrough
CT: control target
= control target key end

     0   :  { %s440_s12 = smov 0   ;;  %s442_s13 = smov 0   ;;  %s498_s0 = inlined_call_operand.vmem [shape: f32[8,36], index: 0, kind: input, shape index: {}]   ;;  %s499_s1 = inlined_call_operand.vmem [shape: f32[8,1], index: 1, kind: input, shape index: {}]   ;;  %s500_s2 = inlined_call_operand.vmem [shape: f32[36,512], index: 2, kind: input, shape index: {}]   ;;  %s501_s3 = inlined_call_operand.vmem [shape: f32[8,512], index: 3, kind: output, shape index: {}]  }
   0x1   :  { %s444_s14 = smov 0  }
   0x2 LB: > { %s351_s15 = sadd.s32 4294967295, %s417_s14   ;;  %s457_s16 = sadd.s32 1, %s417_s14   ;;  %s417_s14 = sphi %s444_s14, %s504_s14   ;;  %s413_s13 = sphi %s442_s13, %s503_s13   ;;  %s409_s12 = sphi %s440_s12, %s502_s12  }
   0x3   : > { %s59_s17 = ssub.s32 %s417_s14, %s457_s16  ;;  %s62_s18 = sadd.s32 1, %s413_s13 }
   0x4   : > { %p60_p0 = scmp.eq.s32.totalorder %s59_s17, 0  ;;  %p69_p1 = scmp.ne.s32.totalorder %s413_s13, %s409_s12 }
   0x5   : > { %p70_p2 = scmp.eq.s32.totalorder %s417_s14, 0  ;;  %p354_p4 = scmp.ge.s32.totalorder %s417_s14, 2 }
   0x6   : > { %s466_s19 = scalar_select %p60_p0, %s413_s13, %s62_s18  }
   0x7   : > { %p71_p3 = por %p70_p2, %p69_p1  ;;  %127 = sbr.rel (%p354_p4) target bundleno = 26 (0x1a), region = 24 }
   0xc   : > { %130 = sbr.rel (!%p71_p3) target bundleno = 26 (0x1a), region = 28  ;;  %s132_s20 = sand.u32 (%p71_p3), 1, %s413_s13  }
   0xd   : > { %s366_s21 = sshll.u32 (%p71_p3), %s417_s14, 4  ;;  %s367_s22 = smul.u32 (%p71_p3), 80, %s132_s20 }
   0xe   : > { %s137_s25 = scalar_lea.vmem (%p71_p3), %s500_s2, %s366_s21 }
   0xf   : > { %v150_v0 = vld [vmem:[%s137_s25] sm:$0xff] (%p71_p3)  ;;  %v152_v1 = vld [vmem:[%s137_s25 + $0x8] sm:$0xff] (%p71_p3)  ;;  %s134_s26 = scalar_lea.vmem (%p71_p3), [#allocation2], %s367_s22 }
  0x10   : > { %v154_v2 = vld [vmem:[%s137_s25 + $0x20] sm:$0xff] (%p71_p3)  ;;  %151 = vst [vmem:[%s134_s26] sm:$0xff] (%p71_p3), %v150_v0  ;;  %v156_v3 = vld [vmem:[%s137_s25 + $0x28] sm:$0xff] (%p71_p3) }
  0x11   : > { %153 = vst [vmem:[%s134_s26 + $0x8] sm:$0xff] %v152_v1  ;;  %v158_v4 = vld [vmem:[%s137_s25 + $0x40] sm:$0xff]  ;;  %v160_v5 = vld [vmem:[%s137_s25 + $0x48] sm:$0xff] }
  0x12   : > { %155 = vst [vmem:[%s134_s26 + $0x10] sm:$0xff] %v154_v2  ;;  %v162_v6 = vld [vmem:[%s137_s25 + $0x60] sm:$0xff]  ;;  %v164_v7 = vld [vmem:[%s137_s25 + $0x68] sm:$0xff] }
  0x13   : > { %157 = vst [vmem:[%s134_s26 + $0x18] sm:$0xff] %v156_v3  ;;  %v166_v8 = vld [vmem:[%s137_s25 + $0x80] sm:$0xff]  ;;  %v168_v9 = vld [vmem:[%s137_s25 + $0x88] sm:$0xff] }
  0x14   : > { %159 = vst [vmem:[%s134_s26 + $0x20] sm:$0xff] %v158_v4 }
  0x15   : > { %161 = vst [vmem:[%s134_s26 + $0x28] sm:$0xff] %v160_v5 }
  0x16   : > { %163 = vst [vmem:[%s134_s26 + $0x30] sm:$0xff] %v162_v6 }
  0x17   : > { %165 = vst [vmem:[%s134_s26 + $0x38] sm:$0xff] %v164_v7 }
  0x18   : > { %167 = vst [vmem:[%s134_s26 + $0x40] sm:$0xff] %v166_v8 }
  0x19   : > { %169 = vst [vmem:[%s134_s26 + $0x48] sm:$0xff] %v168_v9 }
  0x1a PF: > { %p357_p5 = scmp.ge.s32.totalorder %s417_s14, 1  ;;  %p174_p6 = scmp.lt.s32.totalorder %s417_s14, 3 }
  0x1c   : > { %p175_p7 = pnand %p357_p5, %p174_p6 }
  0x1d   : > { %s181_s27 = sand.u32 (!%p175_p7), 1, %s409_s12   ;;  %s358_s7 = sshll.u32 (!%p175_p7), %s351_s15, 1 }
  0x1e   : > { %178 = sbr.rel (%p175_p7) target bundleno = 183 (0xb7), region = 51  ;;  %p206_p8 = scmp.lt.s32.totalorder (!%p175_p7), %s358_s7, 3 }
  0x1f   : > { %s368_s30 = smul.u32 (!%p175_p7), 80, %s181_s27 }
  0x21   : > { %s183_s4 = scalar_lea.vmem (!%p175_p7), [#allocation2], %s368_s30 }
  0x23   : > { %v222_v10 = vld [vmem:[%s499_s1] sm:$0xff]  ;;  %v419_v11 = vmov 0   ;;  %vm232_vm0 = vcmask 1043456   ;;  %v221_v13 = vld [vmem:[%s183_s4 + $0x48] sm:$0xf]  ;;  %v219_v15 = vld [vmem:[%s183_s4 + $0x38] sm:$0xff] }
  0x24   : > { %394 = vset.pattern.permute.xlu0 %v419_v11  ;;  %v220_v12 = vld [vmem:[%s183_s4 + $0x40] sm:$0xf]  ;;  %v218_v14 = vld [vmem:[%s183_s4 + $0x30] sm:$0xff]  ;;  %362 = vmatpush.msk.msra.mxu1 %vm232_vm0, %v221_v13  ;;  %v217_v17 = vld [vmem:[%s183_s4 + $0x28] sm:$0xff]  ;;  %vm228_vm1 = vcmask 293888   ;;  %s506_s7 = smov (!%p206_p8, %s358_s7), 3 }
  0x25   : > { %225 = vperm.xlu0 %394, %v222_v10   ;;  %360 = vmatpush.msk.msra.mxu0 %vm232_vm0, %v220_v12  ;;  %v216_v16 = vld [vmem:[%s183_s4 + $0x20] sm:$0xff]  ;;  %v214_v18 = vld [vmem:[%s183_s4 + $0x10] sm:$0xff]  ;;  %v215_v19 = vld [vmem:[%s183_s4 + $0x18] sm:$0xff]  ;;  %s359_s8 = sshll.u32 %s506_s7, 3 }
  0x26   : > { %271 = vmatpush.msra.mxu1 %v219_v15  ;;  %v212_v20 = vld [vmem:[%s183_s4] sm:$0xff]  ;;  %v213_v21 = vld [vmem:[%s183_s4 + $0x8] sm:$0xff]  ;;  %s209_s11 = scalar_lea.vmem %s501_s3, %s359_s8 }
  0x27   : > { %251 = vmatpush.msra.mxu0 %v218_v14  ;;  %v211_v22 = vld [vmem:[%s498_s0] sm:$0xff] }
  0x28   : > { %272 = vmatpush.msra.mxu1 %v217_v17 }
  0x29   : > { %252 = vmatpush.msra.mxu0 %v216_v16 }
  0x2a   : > { %273 = vmatpush.msra.mxu1 %v215_v19 }
  0x2b   : > { %253 = vmatpush.msra.mxu0 %v214_v18 }
  0x2c   : > { %274 = vmatpush.msra.mxu1 %v213_v21 }
  0x2d   : > { %254 = vmatpush.msra.mxu0 %v212_v20  ;;  %363 = vmatmul.msk.f32.vlgmr.msra.gmra.mxu1 %vm228_vm1, %v211_v22 }
  0x2e   : > { %361 = vmatmul.msk.f32.vlgmr.msra.gmra.mxu0 %vm228_vm1, %v211_v22 }
  0x97   : > { %v226_v23 = vpop.permute.xlu0 %225 }
  0xaa   : > { %v276_v25 = vpop.f32.mrf.mxu1 }
  0xab   : > { %v256_v24 = vpop.f32.mrf.mxu0  ;;  %v277_v27 = vadd.f32 %v276_v25, %v226_v23 }
  0xac   : > { %v257_v26 = vadd.f32 %v256_v24, %v226_v23 }
  0xad   : > { %v280_v29 = vsub.f32 1.0, %v277_v27 }
  0xae   : > { %v279_v28 = vsub.f32 1.0, %v257_v26 }
  0xaf   : > { %v282_v31 = vmin.f32 %v277_v27, %v280_v29 }
  0xb0   : > { %v281_v30 = vmin.f32 %v257_v26, %v279_v28 }
  0xb1   : > { %v284_v33 = vmul.f32 3.3333333, %v282_v31 }
  0xb2   : > { %v283_v32 = vmul.f32 3.3333333, %v281_v30 }
  0xb3   : > { %v286_v35 = vmax.f32 %v284_v33, 0.0 }
  0xb4   : > { %v285_v34 = vmax.f32 %v283_v32, 0.0 }
  0xb5   : > { %288 = vst [vmem:[%s209_s11 + $0x8] sm:$0xff] %v286_v35 }
  0xb6   : > { %287 = vst [vmem:[%s209_s11] sm:$0xff] %v285_v34 }
  0xb7 PF: > { %p10_p9 = scmp.ge.s32.totalorder %s457_s16, 4   ;;  %s502_s12 = smov %s413_s13 }
  0xb8   : > { %s503_s13 = smov %s466_s19  ;;  %s504_s14 = smov %s457_s16 }
  0xb9   :  { %12 = sbr.rel (!%p10_p9) target bundleno = 2 (0x2), region = 90 }

</bundles_post_ra>
